<compile_context>
chip_gen: v7x
topology: tpu7x:2x2x1
jax: 0.10.0
libtpu: 0.0.40
codegen_flags: <defaults>
</compile_context>

<pallas_src>
import functools

import jax
import jax.numpy as jnp
from jax.experimental import pallas as pl
from jax.experimental.pallas import tpu as pltpu


def _sigma_wrapper_kernel(x_ref, wt_ref, b_ref, hess_in_ref,
                          y_ref, hess_out_ref):
    k = pl.program_id(0)
    last = pl.num_programs(0) - 1
    x = x_ref[...]                                        # [TB, D], native dtype

    # Partial Gram matrix for this batch tile: contract the batch dim of both
    # operands directly (no explicit x.T), accumulate in f32 on the MXU.
    gram = jax.lax.dot_general(
        x, x,
        dimension_numbers=(((0,), (0,)), ((), ())),
        preferred_element_type=jnp.float32)               # [D, D] f32

    @pl.when(k == 0)
    def _init():
        hess_out_ref[...] = gram

    @pl.when(k != 0)
    def _accum():
        hess_out_ref[...] = hess_out_ref[...] + gram

    # Fold in the running sum and the once-per-call 1e-4 * I on the LAST step
    # only (keeps step 0 lean; correct also when the grid has a single step).
    @pl.when(k == last)
    def _finalize():
        d = hess_out_ref.shape[0]
        rows = jax.lax.broadcasted_iota(jnp.int32, (d, d), 0)
        cols = jax.lax.broadcasted_iota(jnp.int32, (d, d), 1)
        base = hess_out_ref[...] + hess_in_ref[...]
        hess_out_ref[...] = jnp.where(rows == cols,
                                      base + jnp.float32(1e-4), base)

    # Wrapped layer: Linear with weight pre-transposed (and pre-cast to bf16)
    # to [D, D_out]; x cast to the weight dtype feeds the bf16-native MXU,
    # accumulation is f32.
    y = jnp.dot(x.astype(wt_ref.dtype), wt_ref[...],
                preferred_element_type=jnp.float32)
    y_ref[...] = (y + b_ref[...]).astype(y_ref.dtype)     # [TB, D_out]


@functools.partial(jax.jit, static_argnames=("tb",), donate_argnums=(3,))
def _sigma_wrapper_forward(x, wt, b2, hess_running, *, tb):
    B, D = x.shape
    D_out = wt.shape[1]
    assert B % tb == 0, (B, tb)
    grid = (B // tb,)

    # Scoped-VMEM budget: every BlockSpec operand is double-buffered by
    # default, so account for 2x on the streamed tiles AND the resident
    # weight / bias / hess in+out blocks, plus headroom.  Cap at 48 MiB so the
    # same code is valid on v7x (64 MiB VMEM/TC) as well as v5e/v6e (128 MiB).
    elt = 4
    vmem_bytes = elt * 2 * (tb * D + tb * D_out + D * D_out + D_out
                            + 2 * D * D) + (4 << 20)
    vmem_bytes = int(min(vmem_bytes, 48 << 20))

    y, hess = pl.pallas_call(
        _sigma_wrapper_kernel,
        out_shape=(
            jax.ShapeDtypeStruct((B, D_out), x.dtype),
            jax.ShapeDtypeStruct((D, D), jnp.float32),
        ),
        grid_spec=pltpu.PrefetchScalarGridSpec(
            num_scalar_prefetch=0,
            grid=grid,
            in_specs=[
                pl.BlockSpec((tb, D), lambda k: (k, 0)),      # x tile (streams)
                pl.BlockSpec((D, D_out), lambda k: (0, 0)),   # W^T bf16 (resident)
                pl.BlockSpec((1, D_out), lambda k: (0, 0)),   # bias (resident)
                pl.BlockSpec((D, D), lambda k: (0, 0)),       # running hess in
            ],
            out_specs=[
                pl.BlockSpec((tb, D_out), lambda k: (k, 0)),  # y tile (streams)
                pl.BlockSpec((D, D), lambda k: (0, 0)),       # hess accumulator
            ],
        ),
        input_output_aliases={3: 1},  # running hess buffer aliased to hess output
        compiler_params=pltpu.CompilerParams(
            dimension_semantics=("arbitrary",),   # batch axis is the hess reduction
            vmem_limit_bytes=vmem_bytes),
    )(x, wt, b2, hess_running)
    return y, hess


def _pick_tb(B, D, D_out, elt=4):
    """Batch-tile selection.

    Whole batch in a single grid step when the (double-buffered) x/y tiles fit
    a small VMEM budget; otherwise the largest aligned divisor, preferring
    512/256/128 so the Gram matmul's K dim fills the MXU.
    """
    if 2 * elt * B * (D + D_out) <= (8 << 20):
        return B
    for c in (512, 256, 128, 64, 32, 16, 8):
        if B % c == 0:
            return c
    return B


class SigmaWrapperState:
    """SigmaWrapper with the stateful hess / cnt carried explicitly in JAX.

    `layer` is taken to be nn.Linear(D, D_out): weight w has PyTorch layout
    [D_out, D]; it is transposed (and optionally cast to bf16) ONCE here so
    the kernel never transposes or re-casts it.
    """

    def __init__(self, w, b, *, tb=None, layer_bf16=True):
        wt = jnp.asarray(w, jnp.float32).T              # [D, D_out]
        self.wt = wt.astype(jnp.bfloat16) if layer_bf16 else wt
        self.b2 = jnp.asarray(b, jnp.float32).reshape(1, -1)   # [1, D_out]
        self.tb = tb                                    # None -> auto
        self.hess = None                                # running sum, like PyTorch
        self.cnt = None

    def __call__(self, x):
        B, D = x.shape
        if self.hess is None:
            self.cnt = 0
            self.hess = jnp.zeros((D, D), jnp.float32)
        tb = self.tb
        if tb is None or tb > B or B % tb != 0:
            tb = _pick_tb(B, D, self.wt.shape[1])
        y, self.hess = _sigma_wrapper_forward(x, self.wt, self.b2, self.hess,
                                              tb=int(tb))
        self.cnt = self.cnt + B
        return y

    def get_stats(self):
        assert self.hess is not None
        return self.hess / self.cnt


if __name__ == "__main__":
    key = jax.random.PRNGKey(0)
    kx1, kx2, kw, kb = jax.random.split(key, 4)

    # Small but lane-aligned shapes: D / D_out multiples of 128.
    B, D, D_out = 64, 128, 128
    x1 = jax.random.normal(kx1, (B, D), dtype=jnp.float32)
    x2 = jax.random.normal(kx2, (B, D), dtype=jnp.float32)
    w = jax.random.normal(kw, (D_out, D), dtype=jnp.float32) * 0.1  # PyTorch layout
    b = jax.random.normal(kb, (D_out,), dtype=jnp.float32) * 0.1

    # --- auto tile: whole batch in one grid step per call ---
    mod = SigmaWrapperState(w, b)
    y1 = mod(x1)   # first call: zero state, accumulate + finalize in-kernel
    y2 = mod(x2)   # second call: exercises the aliased running-sum update
    jax.block_until_ready(y2)
    hess = jax.block_until_ready(mod.hess)

    # Pure-JAX references.
    hp = jax.lax.Precision.HIGHEST
    eye = jnp.eye(D, dtype=jnp.float32)
    hess_ref = (jnp.einsum("bi,bj->ij", x1, x1, precision=hp) + 1e-4 * eye
                + jnp.einsum("bi,bj->ij", x2, x2, precision=hp) + 1e-4 * eye)
    wt_bf16 = jnp.asarray(w, jnp.float32).T.astype(jnp.bfloat16)
    y1_ref = jnp.dot(x1.astype(jnp.bfloat16), wt_bf16,
                     preferred_element_type=jnp.float32) + b
    y2_ref = jnp.dot(x2.astype(jnp.bfloat16), wt_bf16,
                     preferred_element_type=jnp.float32) + b

    assert jnp.allclose(y1, y1_ref, atol=2e-3, rtol=2e-3)
    assert jnp.allclose(y2, y2_ref, atol=2e-3, rtol=2e-3)
    assert jnp.allclose(hess, hess_ref, atol=5e-2, rtol=1e-3)
    assert mod.cnt == 2 * B

    stats = jax.block_until_ready(mod.get_stats())
    assert jnp.allclose(stats, hess_ref / (2 * B), atol=1e-3, rtol=1e-3)

    # --- forced small tile: exercises the multi-step accumulation path ---
    mod2 = SigmaWrapperState(w, b, tb=16)
    y3 = jax.block_until_ready(mod2(x1))      # 4-step grid
    hess2 = jax.block_until_ready(mod2.hess)
    hess2_ref = jnp.einsum("bi,bj->ij", x1, x1, precision=hp) + 1e-4 * eye
    assert jnp.allclose(y3, y1_ref, atol=2e-3, rtol=2e-3)
    assert jnp.allclose(hess2, hess2_ref, atol=5e-2, rtol=1e-3)
    assert mod2.cnt == B

    print("KERNEL_OK")
</pallas_src>

<mosaic_0001>
module attributes {stable_mosaic.version = 11 : i64} {
  func.func @_sigma_wrapper_kernel(%arg0: i32, %arg1: memref<64x128xf32, #tpu.memory_space<vmem>>, %arg2: memref<128x128xbf16, #tpu.memory_space<vmem>>, %arg3: memref<1x128xf32, #tpu.memory_space<vmem>>, %arg4: memref<128x128xf32, #tpu.memory_space<vmem>>, %arg5: memref<64x128xf32, #tpu.memory_space<vmem>>, %arg6: memref<128x128xf32, #tpu.memory_space<vmem>>) attributes {dimension_semantics = [#tpu.dimension_semantics<arbitrary>], iteration_bounds = array<i64: 1>, scalar_prefetch = 0 : i64, scratch_operands = 0 : i64, tpu.core_type = #tpu.core_type<tc>, window_params = [{transform_indices = @transform_0, window_bounds = array<i64: 64, 128>}, {pipeline_mode = #tpu.pipeline_mode<synchronous>, transform_indices = @transform_1, window_bounds = array<i64: 128, 128>}, {pipeline_mode = #tpu.pipeline_mode<synchronous>, transform_indices = @transform_2, window_bounds = array<i64: 1, 128>}, {pipeline_mode = #tpu.pipeline_mode<synchronous>, transform_indices = @transform_3, window_bounds = array<i64: 128, 128>}, {transform_indices = @transform_4, window_bounds = array<i64: 64, 128>}, {pipeline_mode = #tpu.pipeline_mode<synchronous>, transform_indices = @transform_5, window_bounds = array<i64: 128, 128>}]} {
    %c0 = arith.constant 0 : index
    %c0_0 = arith.constant 0 : index
    %0 = vector.load %arg1[%c0, %c0_0] : memref<64x128xf32, #tpu.memory_space<vmem>>, vector<64x128xf32>
    %cst = arith.constant dense<0.000000e+00> : vector<128x128xf32>
    %1 = tpu.matmul %0, %0, %cst {dimension_numbers = #tpu.dot_dimension_numbers<[0], [0], [1], [1], [0, 1, 1, 1], [], []>} : vector<64x128xf32>, vector<64x128xf32>, vector<128x128xf32> -> vector<128x128xf32>
    %c0_i32 = arith.constant 0 : i32
    %2 = arith.cmpi eq, %arg0, %c0_i32 : i32
    %3 = arith.extui %2 : i1 to i32
    %c0_i32_1 = arith.constant 0 : i32
    %4 = arith.cmpi ne, %3, %c0_i32_1 : i32
    scf.if %4 {
      %c0_13 = arith.constant 0 : index
      %c0_14 = arith.constant 0 : index
      %18 = vector.load %arg6[%c0_13, %c0_14] : memref<128x128xf32, #tpu.memory_space<vmem>>, vector<128x128xf32>
      tpu.vector_store %arg6[%c0_13, %c0_14], %1 {strides = array<i32>} : memref<128x128xf32, #tpu.memory_space<vmem>>, vector<128x128xf32>,
    } else {
    }
    %c0_i32_2 = arith.constant 0 : i32
    %5 = arith.cmpi ne, %arg0, %c0_i32_2 : i32
    %6 = arith.extui %5 : i1 to i32
    %c0_i32_3 = arith.constant 0 : i32
    %7 = arith.cmpi ne, %6, %c0_i32_3 : i32
    scf.if %7 {
      %c0_13 = arith.constant 0 : index
      %c0_14 = arith.constant 0 : index
      %18 = vector.load %arg6[%c0_13, %c0_14] : memref<128x128xf32, #tpu.memory_space<vmem>>, vector<128x128xf32>
      %19 = arith.addf %18, %1 : vector<128x128xf32>
      %c0_15 = arith.constant 0 : index
      %c0_16 = arith.constant 0 : index
      %20 = vector.load %arg6[%c0_15, %c0_16] : memref<128x128xf32, #tpu.memory_space<vmem>>, vector<128x128xf32>
      tpu.vector_store %arg6[%c0_15, %c0_16], %19 {strides = array<i32>} : memref<128x128xf32, #tpu.memory_space<vmem>>, vector<128x128xf32>,
    } else {
    }
    %c0_i32_4 = arith.constant 0 : i32
    %8 = arith.cmpi eq, %arg0, %c0_i32_4 : i32
    %9 = arith.extui %8 : i1 to i32
    %c0_i32_5 = arith.constant 0 : i32
    %10 = arith.cmpi ne, %9, %c0_i32_5 : i32
    scf.if %10 {
      %18 = tpu.iota {dimensions = array<i32: 0>} : vector<128x128xi32>
      %19 = tpu.iota {dimensions = array<i32: 1>} : vector<128x128xi32>
      %c0_13 = arith.constant 0 : index
      %c0_14 = arith.constant 0 : index
      %20 = vector.load %arg6[%c0_13, %c0_14] : memref<128x128xf32, #tpu.memory_space<vmem>>, vector<128x128xf32>
      %c0_15 = arith.constant 0 : index
      %c0_16 = arith.constant 0 : index
      %21 = vector.load %arg4[%c0_15, %c0_16] : memref<128x128xf32, #tpu.memory_space<vmem>>, vector<128x128xf32>
      %22 = arith.addf %20, %21 : vector<128x128xf32>
      %23 = arith.cmpi eq, %18, %19 : vector<128x128xi32>
      %cst_17 = arith.constant 9.99999974E-5 : f32
      %24 = vector.broadcast %cst_17 : f32 to vector<128x128xf32>
      %25 = arith.addf %22, %24 : vector<128x128xf32>
      %26 = arith.select %23, %25, %22 : vector<128x128xi1>, vector<128x128xf32>
      %c0_18 = arith.constant 0 : index
      %c0_19 = arith.constant 0 : index
      %27 = vector.load %arg6[%c0_18, %c0_19] : memref<128x128xf32, #tpu.memory_space<vmem>>, vector<128x128xf32>
      tpu.vector_store %arg6[%c0_18, %c0_19], %26 {strides = array<i32>} : memref<128x128xf32, #tpu.memory_space<vmem>>, vector<128x128xf32>,
    } else {
    }
    %11 = arith.truncf %0 : vector<64x128xf32> to vector<64x128xbf16>
    %c0_6 = arith.constant 0 : index
    %c0_7 = arith.constant 0 : index
    %12 = vector.load %arg2[%c0_6, %c0_7] : memref<128x128xbf16, #tpu.memory_space<vmem>>, vector<128x128xbf16>
    %cst_8 = arith.constant dense<0.000000e+00> : vector<64x128xf32>
    %13 = tpu.matmul %11, %12, %cst_8 {dimension_numbers = #tpu.dot_dimension_numbers<[1], [0], [0], [1], [0, 0, 1, 1], [], []>} : vector<64x128xbf16>, vector<128x128xbf16>, vector<64x128xf32> -> vector<64x128xf32>
    %c0_9 = arith.constant 0 : index
    %c0_10 = arith.constant 0 : index
    %14 = vector.load %arg3[%c0_9, %c0_10] : memref<1x128xf32, #tpu.memory_space<vmem>>, vector<1x128xf32>
    %15 = vector.broadcast %14 : vector<1x128xf32> to vector<64x128xf32>
    %16 = arith.addf %13, %15 : vector<64x128xf32>
    %c0_11 = arith.constant 0 : index
    %c0_12 = arith.constant 0 : index
    %17 = vector.load %arg5[%c0_11, %c0_12] : memref<64x128xf32, #tpu.memory_space<vmem>>, vector<64x128xf32>
    tpu.vector_store %arg5[%c0_11, %c0_12], %16 {strides = array<i32>} : memref<64x128xf32, #tpu.memory_space<vmem>>, vector<64x128xf32>,
    return
  }
  func.func @transform_0(%arg0: i32) -> (i32, i32) {
    %c0_i32 = arith.constant 0 : i32
    %c0_i32_0 = arith.constant 0 : i32
    return %arg0, %c0_i32 : i32, i32
  }
  func.func @transform_1(%arg0: i32) -> (i32, i32) {
    %c0_i32 = arith.constant 0 : i32
    %c0_i32_0 = arith.constant 0 : i32
    %c0_i32_1 = arith.constant 0 : i32
    return %c0_i32, %c0_i32_0 : i32, i32
  }
  func.func @transform_2(%arg0: i32) -> (i32, i32) {
    %c0_i32 = arith.constant 0 : i32
    %c0_i32_0 = arith.constant 0 : i32
    %c0_i32_1 = arith.constant 0 : i32
    return %c0_i32, %c0_i32_0 : i32, i32
  }
  func.func @transform_3(%arg0: i32) -> (i32, i32) {
    %c0_i32 = arith.constant 0 : i32
    %c0_i32_0 = arith.constant 0 : i32
    %c0_i32_1 = arith.constant 0 : i32
    return %c0_i32, %c0_i32_0 : i32, i32
  }
  func.func @transform_4(%arg0: i32) -> (i32, i32) {
    %c0_i32 = arith.constant 0 : i32
    %c0_i32_0 = arith.constant 0 : i32
    return %arg0, %c0_i32 : i32, i32
  }
  func.func @transform_5(%arg0: i32) -> (i32, i32) {
    %c0_i32 = arith.constant 0 : i32
    %c0_i32_0 = arith.constant 0 : i32
    %c0_i32_1 = arith.constant 0 : i32
    return %c0_i32, %c0_i32_0 : i32, i32
  }
}

</mosaic_0001>

<bundles_post_ra>
// kernel: _sigma_wrapper_forward.1
= control target key start
LH: loop header
LB: loop body
LE: loop exit
PB: predicated region body
PF: predicated region fallthrough
CT: control target
= control target key end

     0   :  { %11 = vsyncpa [#allocation3], 0  ;;  %s1128_s0 = inlined_call_operand.hbm [shape: f32[64,128], index: 0, kind: input, shape index: {}]   ;;  %s1129_s1 = inlined_call_operand.hbm [shape: bf16[128,128], index: 1, kind: input, shape index: {}]   ;;  %s1130_s2 = inlined_call_operand.vmem [shape: f32[1,128], index: 2, kind: input, shape index: {}]   ;;  %s1131_s3 = inlined_call_operand.hbm [shape: f32[128,128], index: 3, kind: input, shape index: {}, may-alias: {3,5}]   ;;  %s1132_s4 = inlined_call_operand.hbm [shape: f32[64,128], index: 4, kind: output, shape index: {0}]   ;;  %s1133_s5 = inlined_call_operand.hbm [shape: f32[128,128], index: 5, kind: output, shape index: {1}, may-alias: {3,5}]  }
   0x1   :  { %12 = vsyncpa [#allocation6], 0 }
   0x2   :  { %13 = vsyncpa [#allocation4], 0 }
   0x3   :  { %14 = vsyncpa [#allocation10], 0  ;;  %s962_s18 = smov [#allocation5]   ;;  %s844_s22 = scalar_lea.hbm %s1129_s1, 1024 }
   0x4   :  { %s32_s19 = sshll.u32 %s962_s18, 4  ;;  %p845_p0 = scmp.ne.s32.totalorder %s1129_s1, %s844_s22  ;;  %s33_s19 = int_to_ptr.vmem [resolvable:$true] %s32_s19 }
   0x5   :  { %p848_p1 = scmp.lt.u32.totalorder %s844_s22, %s1129_s1 }
   0x7   :  { %p850_p2 = pnand %p848_p1, %p845_p0 }
   0x9   :  { %853 = shalt.err (!%p850_p2)
}
   0xa   :  { %s854_s27 = scalar_lea.vmem %s33_s19, 1024  ;;  %p859_p4 = scmp.lt.s32.totalorder %s33_s19, %s33_s19 }
   0xb   :  { %p855_p3 = scmp.ne.s32.totalorder %s33_s19, %s854_s27  ;;  %p860_p5 = scmp.lt.s32.totalorder %s854_s27, %s854_s27 }
   0xd   :  { %p861_p6 = por %p860_p5, %p859_p4 }
   0xf   :  { %p862_p7 = pnand %p861_p6, %p855_p3 }
  0x11   :  { %865 = shalt.err (!%p862_p7)
}
  0x12   :  { %s963_s28 = smov 64   ;;  %s964_s29 = smov 4  }
  0x13   :  { %38 = dma.hbm_to_vmem [thread:$0]  %s1129_s1, 1024, %s33_s19, [#allocation6], %s963_s28, %s963_s28, %s964_s29  }
  0x14   :  { %s965_s7 = smov [#allocation2]   ;;  %s866_s11 = scalar_lea.hbm %s1128_s0, 1024 }
  0x15   :  { %s20_s8 = sshll.u32 %s965_s7, 4  ;;  %p867_p8 = scmp.ne.s32.totalorder %s1128_s0, %s866_s11  ;;  %s21_s8 = int_to_ptr.vmem [resolvable:$true] %s20_s8 }
  0x16   :  { %p870_p9 = scmp.lt.u32.totalorder %s866_s11, %s1128_s0 }
  0x18   :  { %p872_p10 = pnand %p870_p9, %p867_p8 }
  0x1a   :  { %875 = shalt.err (!%p872_p10)
}
  0x1b   :  { %s876_s16 = scalar_lea.vmem %s21_s8, 1024  ;;  %p881_p12 = scmp.lt.s32.totalorder %s21_s8, %s21_s8 }
  0x1c   :  { %p877_p11 = scmp.ne.s32.totalorder %s21_s8, %s876_s16  ;;  %p882_p13 = scmp.lt.s32.totalorder %s876_s16, %s876_s16 }
  0x1e   :  { %p883_p0 = por %p882_p13, %p881_p12 }
  0x20   :  { %p884_p1 = pnand %p883_p0, %p877_p11 }
  0x22   :  { %887 = shalt.err (!%p884_p1)
}
  0x23   :  { %s966_s1 = smov 128   ;;  %s967_s17 = smov 8  }
  0x24   :  { %26 = dma.hbm_to_vmem [thread:$0]  %s1128_s0, 1024, %s21_s8, [#allocation3], %s966_s1, %s966_s1, %s967_s17  }
  0x25   :  { %s968_s20 = smov [#allocation7]   ;;  %s888_s24 = scalar_lea.hbm %s1131_s3, 2048 }
  0x26   :  { %s46_s21 = sshll.u32 %s968_s20, 4  ;;  %p889_p2 = scmp.ne.s32.totalorder %s1131_s3, %s888_s24  ;;  %s47_s21 = int_to_ptr.vmem [resolvable:$true] %s46_s21 }
  0x27   :  { %p892_p3 = scmp.lt.u32.totalorder %s888_s24, %s1131_s3 }
  0x29   :  { %p894_p4 = pnand %p892_p3, %p889_p2 }
  0x2b   :  { %897 = shalt.err (!%p894_p4)
}
  0x2c   :  { %s898_s29 = scalar_lea.vmem %s47_s21, 2048  ;;  %p903_p6 = scmp.lt.s32.totalorder %s47_s21, %s47_s21 }
  0x2d   :  { %p899_p5 = scmp.ne.s32.totalorder %s47_s21, %s898_s29  ;;  %p904_p7 = scmp.lt.s32.totalorder %s898_s29, %s898_s29 }
  0x2f   :  { %p905_p8 = por %p904_p7, %p903_p6 }
  0x31   :  { %p906_p9 = pnand %p905_p8, %p899_p5 }
  0x33   :  { %909 = shalt.err (!%p906_p9)
}
  0x34   :  { %52 = dma.hbm_to_vmem [thread:$0]  %s1131_s3, 2048, %s47_s21, [#allocation6], %s966_s1, %s966_s1, %s967_s17  }
  0x35   :  { %954 = dma.done.wait [#allocation3], 1024  }
  0x36   :  { %955 = vsyncadd [#allocation3], 4294966272 }
  0x37   :  { %956 = dma.done.wait [#allocation6], 3072  }
  0x38   :  { %957 = vsyncadd [#allocation6], 4294964224  ;;  %v63_v0 = vld [vmem:[#allocation2] sm:$0xff]  ;;  %v64_v1 = vld [vmem:[#allocation2 + $0x8] sm:$0xff]  ;;  %vm103_vm0 = vcmask 523264  }
  0x39   :  { %71 = vxpose.xlu0.b32.start [1/8] (short) %v63_v0, 128  ;;  %v810_v2 = vpack.c.bf16 %v64_v1, %v63_v0  ;;  %v65_v3 = vld [vmem:[#allocation2 + $0x10] sm:$0xff]  ;;  %v66_v4 = vld [vmem:[#allocation2 + $0x18] sm:$0xff]  ;;  %v67_v6 = vld [vmem:[#allocation2 + $0x20] sm:$0xff] }
  0x3a   :  { %v814_v5 = vpack.c.bf16 %v66_v4, %v65_v3  ;;  %v68_v7 = vld [vmem:[#allocation2 + $0x28] sm:$0xff]  ;;  %v69_v9 = vld [vmem:[#allocation2 + $0x30] sm:$0xff]  ;;  %v70_v10 = vld [vmem:[#allocation2 + $0x38] sm:$0xff] }
  0x3b   :  { %811 = vmatprep.subr.bf16.mxu0 %v810_v2  ;;  %802 = vmatprep.mubr.bf16.mxu1 %v810_v2  ;;  %v818_v8 = vpack.c.bf16 %v68_v7, %v67_v6  ;;  %v822_v11 = vpack.c.bf16 %v70_v10, %v69_v9  ;;  %v836_v12 = vld [vmem:[#allocation5] sm:$0xff]   ;;  %v837_v13 = vld [vmem:[#allocation5 + $0x8] sm:$0xff]   ;;  %v838_v14 = vld [vmem:[#allocation5 + $0x10] sm:$0xff]  }
  0x3c   :  { %813 = vmatpush3.bf16.msra.mxu0 %v810_v2  ;;  %786 = vmatprep.subr.bf16.mxu1 %v836_v12  ;;  %v839_v15 = vld [vmem:[#allocation5 + $0x18] sm:$0xff]   ;;  %v840_v16 = vld [vmem:[#allocation5 + $0x20] sm:$0xff]   ;;  %v841_v17 = vld [vmem:[#allocation5 + $0x28] sm:$0xff]  }
  0x3d   :  { %72 = vxpose.xlu0.b32.cont [2/8] (short) %v64_v1, 128  ;;  %815 = vmatprep.subr.bf16.mxu0 %v814_v5  ;;  %v842_v18 = vld [vmem:[#allocation5 + $0x30] sm:$0xff]   ;;  %v843_v19 = vld [vmem:[#allocation5 + $0x38] sm:$0xff]   ;;  %v701_v39 = vld [vmem:[%s1130_s2] ss:$0 sm:$0xff]  ;;  %s969_s2 = smov [#allocation8]  }
  0x3e   :  { %787 = vmatpush3.bf16.msra.mxu1 %v836_v12  ;;  %s656_s7 = sshll.u32 %s969_s2, 4  ;;  %s657_s7 = int_to_ptr.vmem [resolvable:$true] %s656_s7 }
  0x3f   :  { %788 = vmatprep.subr.bf16.mxu1 %v837_v13  ;;  %s910_s8 = scalar_lea.vmem %s657_s7, 1024  ;;  %p915_p11 = scmp.lt.s32.totalorder %s657_s7, %s657_s7 }
  0x40   :  { %817 = vmatpush3.bf16.msra.mxu0 %v814_v5  ;;  %p911_p10 = scmp.ne.s32.totalorder %s657_s7, %s910_s8  ;;  %p916_p12 = scmp.lt.s32.totalorder %s910_s8, %s910_s8 }
  0x41   :  { %73 = vxpose.xlu0.b32.cont [3/8] (short) %v65_v3, 128  ;;  %819 = vmatprep.subr.bf16.mxu0 %v818_v8 }
  0x42   :  { %789 = vmatpush3.bf16.msra.mxu1 %v837_v13  ;;  %p917_p13 = por %p916_p12, %p915_p11 }
  0x43   :  { %790 = vmatprep.subr.bf16.mxu1 %v838_v14 }
  0x44   :  { %821 = vmatpush3.bf16.msra.mxu0 %v818_v8  ;;  %p918_p0 = pnand %p917_p13, %p911_p10 }
  0x45   :  { %74 = vxpose.xlu0.b32.cont [4/8] (short) %v66_v4, 128  ;;  %823 = vmatprep.subr.bf16.mxu0 %v822_v11 }
  0x46   :  { %791 = vmatpush3.bf16.msra.mxu1 %v838_v14 }
  0x47   :  { %792 = vmatprep.subr.bf16.mxu1 %v839_v15 }
  0x48   :  { %825 = vmatpush3.bf16.msra.mxu0 %v822_v11 }
  0x49   :  { %75 = vxpose.xlu0.b32.cont [5/8] (short) %v67_v6, 128 }
  0x4a   :  { %793 = vmatpush3.bf16.msra.mxu1 %v839_v15 }
  0x4b   :  { %794 = vmatprep.subr.bf16.mxu1 %v840_v16 }
  0x4d   :  { %76 = vxpose.xlu0.b32.cont [6/8] (short) %v68_v7, 128 }
  0x4e   :  { %795 = vmatpush3.bf16.msra.mxu1 %v840_v16 }
  0x4f   :  { %796 = vmatprep.subr.bf16.mxu1 %v841_v17 }
  0x51   :  { %77 = vxpose.xlu0.b32.cont [7/8] (short) %v69_v9, 128 }
  0x52   :  { %797 = vmatpush3.bf16.msra.mxu1 %v841_v17 }
  0x53   :  { %798 = vmatprep.subr.bf16.mxu1 %v842_v18 }
  0x55   :  { %78 = vxpose.xlu0.b32.end [8/8] (short) %v70_v10, 128 }
  0x56   :  { %799 = vmatpush3.bf16.msra.mxu1 %v842_v18 }
  0x57   :  { %800 = vmatprep.subr.bf16.mxu1 %v843_v19 }
  0x5a   :  { %801 = vmatpush3.bf16.msra.mxu1 %v843_v19 }
  0x5d   :  { %803 = vmatmul.mubr.bf16.vlgmr.msra.gmra.mrb[0].mxu1 %v814_v5 }
  0x5e   :  { %806 = vmatprep.mubr.bf16.mxu1 %v818_v8 }
  0x65   :  { %807 = vmatmul.mubr.bf16.gmra.mrb[4].mxu1 %v822_v11 }
  0xb9   :  { %v87_v20 = vpop.trf.xlu0 }
  0xba   :  { %762 = vmatprep.mubr.msk.f32.mxu0 %vm103_vm0, %v87_v20 }
  0xbd   :  { %v88_v21 = vpop.trf.xlu0 }
  0xbe   :  { %763 = vmatmul.mubr.msk.f32.vlgmr.msra.gmra.mrb[0].mxu0 %vm103_vm0, %v88_v21 }
  0xc1   :  { %v89_v22 = vpop.trf.xlu0 }
  0xc2   :  { %765 = vmatprep.mubr.msk.f32.mxu0 %vm103_vm0, %v89_v22 }
  0xc5   :  { %v90_v23 = vpop.trf.xlu0 }
  0xc6   :  { %766 = vmatmul.mubr.msk.f32.gmra.mrb[2].mxu0 %vm103_vm0, %v90_v23 }
  0xc9   :  { %v91_v24 = vpop.trf.xlu0 }
  0xca   :  { %768 = vmatprep.mubr.msk.f32.mxu0 %vm103_vm0, %v91_v24 }
  0xcd   :  { %v92_v25 = vpop.trf.xlu0 }
  0xce   :  { %769 = vmatmul.mubr.msk.f32.gmra.mrb[4].mxu0 %vm103_vm0, %v92_v25 }
  0xd1   :  { %v93_v26 = vpop.trf.xlu0 }
  0xd2   :  { %771 = vmatprep.mubr.msk.f32.mxu0 %vm103_vm0, %v93_v26 }
  0xd5   :  { %v94_v27 = vpop.trf.xlu0 }
  0xd6   :  { %772 = vmatmul.mubr.msk.f32.gmra.mrb[6].mxu0 %vm103_vm0, %v94_v27 }
  0xd9   :  { %v95_v28 = vpop.trf.xlu0 }
  0xda   :  { %774 = vmatprep.mubr.msk.f32.mxu0 %vm103_vm0, %v95_v28 }
  0xdd   :  { %v96_v29 = vpop.trf.xlu0 }
  0xde   :  { %775 = vmatmul.mubr.msk.f32.gmra.mrb[8].mxu0 %vm103_vm0, %v96_v29 }
  0xe1   :  { %v97_v30 = vpop.trf.xlu0 }
  0xe2   :  { %777 = vmatprep.mubr.msk.f32.mxu0 %vm103_vm0, %v97_v30 }
  0xe5   :  { %v98_v31 = vpop.trf.xlu0 }
  0xe6   :  { %778 = vmatmul.mubr.msk.f32.gmra.mrb[10].mxu0 %vm103_vm0, %v98_v31 }
  0xe9   :  { %v99_v32 = vpop.trf.xlu0 }
  0xea   :  { %780 = vmatprep.mubr.msk.f32.mxu0 %vm103_vm0, %v99_v32 }
  0xed   :  { %v100_v33 = vpop.trf.xlu0 }
  0xee   :  { %781 = vmatmul.mubr.msk.f32.gmra.mrb[12].mxu0 %vm103_vm0, %v100_v33 }
  0xf1   :  { %v101_v34 = vpop.trf.xlu0 }
  0xf2   :  { %783 = vmatprep.mubr.msk.f32.mxu0 %vm103_vm0, %v101_v34 }
  0xf5   :  { %v102_v35 = vpop.trf.xlu0 }
  0xf6   :  { %784 = vmatmul.mubr.msk.f32.gmra.mrb[14].mxu0 %vm103_vm0, %v102_v35 }
 0x130   :  { %v804_v36 = vpop.f32.mrb[0].mxu1 }
 0x131   :  { %v612_v37 = vpop.f32.mrb[1].mxu1  ;;  %v621_v41 = vadd.f32 %v804_v36, %v701_v39 }
 0x132   :  { %v805_v38 = vpop.f32.mrb[2].mxu1  ;;  %v613_v42 = vadd.f32 %v701_v39, %v612_v37 }
 0x133   :  { %v615_v40 = vpop.f32.mrb[3].mxu1  ;;  %v624_v43 = vadd.f32 %v805_v38, %v701_v39  ;;  %645 = vst [vmem:[#allocation8 + $0x10] sm:$0xff] %v621_v41 }
 0x134   :  { %v616_v44 = vadd.f32 %v701_v39, %v615_v40  ;;  %643 = vst [vmem:[#allocation8] sm:$0xff] %v613_v42 }
 0x135   :  { %646 = vst [vmem:[#allocation8 + $0x18] sm:$0xff] %v624_v43 }
 0x136   :  { %644 = vst [vmem:[#allocation8 + $0x8] sm:$0xff] %v616_v44 }
 0x138   :  { %v808_v45 = vpop.f32.mrb[4].mxu1 }
 0x139   :  { %v628_v46 = vpop.f32.mrb[5].mxu1  ;;  %v637_v49 = vadd.f32 %v808_v45, %v701_v39 }
 0x13a   :  { %v809_v47 = vpop.f32.mrb[6].mxu1  ;;  %v629_v50 = vadd.f32 %v701_v39, %v628_v46 }
 0x13b   :  { %v631_v48 = vpop.f32.mrb[7].mxu1  ;;  %v640_v51 = vadd.f32 %v809_v47, %v701_v39  ;;  %649 = vst [vmem:[#allocation8 + $0x30] sm:$0xff] %v637_v49 }
 0x13c   :  { %v632_v52 = vadd.f32 %v701_v39, %v631_v48  ;;  %647 = vst [vmem:[#allocation8 + $0x20] sm:$0xff] %v629_v50 }
 0x13d   :  { %650 = vst [vmem:[#allocation8 + $0x38] sm:$0xff] %v640_v51 }
 0x13e   :  { %648 = vst [vmem:[#allocation8 + $0x28] sm:$0xff] %v632_v52 }
 0x13f   :  { %921 = shalt.err (!%p918_p0)
}
 0x140   :  { %s922_s11 = scalar_lea.hbm %s1132_s4, 1024 }
 0x141   :  { %p923_p1 = scmp.ne.s32.totalorder %s1132_s4, %s922_s11  ;;  %p926_p2 = scmp.lt.u32.totalorder %s922_s11, %s1132_s4 }
 0x143   :  { %p928_p3 = pnand %p926_p2, %p923_p1 }
 0x145   :  { %931 = shalt.err (!%p928_p3)
}
 0x146   :  { %662 = dma.vmem_to_hbm [thread:$0]  %s657_s7, 1024, %s1132_s4, [#allocation4], %s966_s1, %s966_s1, %s967_s17   ;;  %v372_v53 = vlaneseq  ;;  %v408_v57 = vld [vmem:[#allocation7 + $0x8] sm:$0xff]  ;;  %v407_v58 = vld [vmem:[#allocation7] sm:$0xff]  ;;  %v410_v4 = vld [vmem:[#allocation7 + $0x18] sm:$0xff] }
 0x147   :  { %v409_v6 = vld [vmem:[#allocation7 + $0x10] sm:$0xff]  ;;  %v412_v16 = vld [vmem:[#allocation7 + $0x28] sm:$0xff]  ;;  %v411_v18 = vld [vmem:[#allocation7 + $0x20] sm:$0xff]  ;;  %s970_s4 = smov [#allocation9]  }
 0x148   :  { %v1077_v54 = vshrl.u32 %v372_v53, 7  ;;  %v1080_v56 = vand.u32 127, %v372_v53  ;;  %v414_v28 = vld [vmem:[#allocation7 + $0x38] sm:$0xff]  ;;  %v413_v30 = vld [vmem:[#allocation7 + $0x30] sm:$0xff]  ;;  %v416_v40 = vld [vmem:[#allocation7 + $0x48] sm:$0xff]  ;;  %s668_s19 = sshll.u32 %s970_s4, 4  ;;  %s669_s19 = int_to_ptr.vmem [resolvable:$true] %s668_s19 }
 0x149   :  { %v415_v42 = vld [vmem:[#allocation7 + $0x40] sm:$0xff]  ;;  %v418_v52 = vld [vmem:[#allocation7 + $0x58] sm:$0xff]  ;;  %s932_s20 = scalar_lea.vmem %s669_s19, 2048  ;;  %p937_p5 = scmp.lt.s32.totalorder %s669_s19, %s669_s19 }
 0x14a   :  { %v374_v55 = vadd.s32 8, %v1077_v54  ;;  %vm439_vm2 = vcmp.eq.s32.totalorder %v1077_v54, %v1080_v56  ;;  %v376_v3 = vadd.s32 24, %v1077_v54  ;;  %v375_v5 = vadd.s32 16, %v1077_v54  ;;  %p933_p4 = scmp.ne.s32.totalorder %s669_s19, %s932_s20  ;;  %p938_p6 = scmp.lt.s32.totalorder %s932_s20, %s932_s20 }
 0x14b   :  { %v378_v15 = vadd.s32 40, %v1077_v54  ;;  %v377_v17 = vadd.s32 32, %v1077_v54  ;;  %v380_v27 = vadd.s32 56, %v1077_v54  ;;  %v379_v29 = vadd.s32 48, %v1077_v54 }
 0x14c   :  { %vm440_vm1 = vcmp.eq.s32.totalorder %v374_v55, %v1080_v56  ;;  %vm442_vm3 = vcmp.eq.s32.totalorder %v376_v3, %v1080_v56  ;;  %vm441_vm4 = vcmp.eq.s32.totalorder %v375_v5, %v1080_v56  ;;  %v382_v39 = vadd.s32 72, %v1077_v54  ;;  %v417_v55 = vld [vmem:[#allocation7 + $0x50] sm:$0xff]  ;;  %p939_p7 = por %p938_p6, %p937_p5 }
 0x14d   :  { %vm444_vm5 = vcmp.eq.s32.totalorder %v378_v15, %v1080_v56  ;;  %vm443_vm6 = vcmp.eq.s32.totalorder %v377_v17, %v1080_v56  ;;  %vm446_vm7 = vcmp.eq.s32.totalorder %v380_v27, %v1080_v56  ;;  %vm445_vm8 = vcmp.eq.s32.totalorder %v379_v29, %v1080_v56 }
 0x14e   :  { %v381_v41 = vadd.s32 64, %v1077_v54  ;;  %vm448_vm9 = vcmp.eq.s32.totalorder %v382_v39, %v1080_v56  ;;  %v384_v51 = vadd.s32 88, %v1077_v54  ;;  %v383_v53 = vadd.s32 80, %v1077_v54  ;;  %p940_p8 = pnand %p939_p7, %p933_p4 }
 0x14f   :  { %v385_v3 = vadd.s32 96, %v1077_v54  ;;  %v387_v15 = vadd.s32 112, %v1077_v54 }
 0x150   :  { %vm447_vm10 = vcmp.eq.s32.totalorder %v381_v41, %v1080_v56  ;;  %vm450_vm11 = vcmp.eq.s32.totalorder %v384_v51, %v1080_v56  ;;  %vm449_vm12 = vcmp.eq.s32.totalorder %v383_v53, %v1080_v56 }
 0x151   :  { %vm451_vm14 = vcmp.eq.s32.totalorder %v385_v3, %v1080_v56  ;;  %vm453_vm0 = vcmp.eq.s32.totalorder %v387_v15, %v1080_v56 }
 0x191   :  { %v764_v59 = vpop.f32.mrb[0].mxu0 }
 0x192   :  { %v424_v60 = vadd.f32 %v764_v59, %v408_v57  ;;  %v218_v61 = vpop.f32.mrb[1].mxu0 }
 0x193   :  { %v423_v62 = vadd.f32 %v407_v58, %v218_v61 }
 0x194   :  { %v456_v63 = vadd.f32 0.0001, %v424_v60 }
 0x195   :  { %v455_v0 = vadd.f32 0.0001, %v423_v62 }
 0x196   :  { %v472_v1 = vsel %vm440_vm1, %v456_v63, %v424_v60 }
 0x197   :  { %488 = vst [vmem:[#allocation9 + $0x8] sm:$0xff] %v472_v1  ;;  %v471_v2 = vsel %vm439_vm2, %v455_v0, %v423_v62  ;;  %v386_v1 = vadd.s32 104, %v1077_v54 }
 0x198   :  { %487 = vst [vmem:[#allocation9] sm:$0xff] %v471_v2  ;;  %v420_v2 = vld [vmem:[#allocation7 + $0x68] sm:$0xff] }
 0x199   :  { %v767_v7 = vpop.f32.mrb[2].mxu0  ;;  %vm452_vm13 = vcmp.eq.s32.totalorder %v386_v1, %v1080_v56 }
 0x19a   :  { %v426_v8 = vadd.f32 %v767_v7, %v410_v4  ;;  %v228_v9 = vpop.f32.mrb[3].mxu0  ;;  %v419_v4 = vld [vmem:[#allocation7 + $0x60] sm:$0xff] }
 0x19b   :  { %v425_v10 = vadd.f32 %v409_v6, %v228_v9 }
 0x19c   :  { %v458_v11 = vadd.f32 0.0001, %v426_v8 }
 0x19d   :  { %v457_v12 = vadd.f32 0.0001, %v425_v10 }
 0x19e   :  { %v474_v13 = vsel %vm442_vm3, %v458_v11, %v426_v8 }
 0x19f   :  { %490 = vst [vmem:[#allocation9 + $0x18] sm:$0xff] %v474_v13  ;;  %v473_v14 = vsel %vm441_vm4, %v457_v12, %v425_v10  ;;  %v388_v13 = vadd.s32 120, %v1077_v54 }
 0x1a0   :  { %489 = vst [vmem:[#allocation9 + $0x10] sm:$0xff] %v473_v14  ;;  %v422_v14 = vld [vmem:[#allocation7 + $0x78] sm:$0xff] }
 0x1a1   :  { %v770_v19 = vpop.f32.mrb[4].mxu0  ;;  %vm454_vm15 = vcmp.eq.s32.totalorder %v388_v13, %v1080_v56 }
 0x1a2   :  { %v428_v20 = vadd.f32 %v770_v19, %v412_v16  ;;  %v238_v21 = vpop.f32.mrb[5].mxu0  ;;  %v421_v16 = vld [vmem:[#allocation7 + $0x70] sm:$0xff] }
 0x1a3   :  { %v427_v22 = vadd.f32 %v411_v18, %v238_v21 }
 0x1a4   :  { %v460_v23 = vadd.f32 0.0001, %v428_v20 }
 0x1a5   :  { %v459_v24 = vadd.f32 0.0001, %v427_v22 }
 0x1a6   :  { %v476_v25 = vsel %vm444_vm5, %v460_v23, %v428_v20 }
 0x1a7   :  { %492 = vst [vmem:[#allocation9 + $0x28] sm:$0xff] %v476_v25  ;;  %v475_v26 = vsel %vm443_vm6, %v459_v24, %v427_v22 }
 0x1a8   :  { %491 = vst [vmem:[#allocation9 + $0x20] sm:$0xff] %v475_v26 }
 0x1a9   :  { %v773_v31 = vpop.f32.mrb[6].mxu0 }
 0x1aa   :  { %v430_v32 = vadd.f32 %v773_v31, %v414_v28  ;;  %v248_v33 = vpop.f32.mrb[7].mxu0 }
 0x1ab   :  { %v429_v34 = vadd.f32 %v413_v30, %v248_v33 }
 0x1ac   :  { %v462_v35 = vadd.f32 0.0001, %v430_v32 }
 0x1ad   :  { %v461_v36 = vadd.f32 0.0001, %v429_v34 }
 0x1ae   :  { %v478_v37 = vsel %vm446_vm7, %v462_v35, %v430_v32 }
 0x1af   :  { %494 = vst [vmem:[#allocation9 + $0x38] sm:$0xff] %v478_v37  ;;  %v477_v38 = vsel %vm445_vm8, %v461_v36, %v429_v34 }
 0x1b0   :  { %493 = vst [vmem:[#allocation9 + $0x30] sm:$0xff] %v477_v38 }
 0x1b1   :  { %v776_v43 = vpop.f32.mrb[8].mxu0 }
 0x1b2   :  { %v432_v44 = vadd.f32 %v776_v43, %v416_v40  ;;  %v258_v45 = vpop.f32.mrb[9].mxu0 }
 0x1b3   :  { %v431_v46 = vadd.f32 %v415_v42, %v258_v45 }
 0x1b4   :  { %v464_v47 = vadd.f32 0.0001, %v432_v44 }
 0x1b5   :  { %v463_v48 = vadd.f32 0.0001, %v431_v46 }
 0x1b6   :  { %v480_v49 = vsel %vm448_vm9, %v464_v47, %v432_v44 }
 0x1b7   :  { %496 = vst [vmem:[#allocation9 + $0x48] sm:$0xff] %v480_v49  ;;  %v479_v50 = vsel %vm447_vm10, %v463_v48, %v431_v46 }
 0x1b8   :  { %495 = vst [vmem:[#allocation9 + $0x40] sm:$0xff] %v479_v50 }
 0x1b9   :  { %v779_v57 = vpop.f32.mrb[10].mxu0 }
 0x1ba   :  { %v434_v58 = vadd.f32 %v779_v57, %v418_v52  ;;  %v268_v59 = vpop.f32.mrb[11].mxu0 }
 0x1bb   :  { %v433_v60 = vadd.f32 %v417_v55, %v268_v59 }
 0x1bc   :  { %v466_v61 = vadd.f32 0.0001, %v434_v58 }
 0x1bd   :  { %v465_v62 = vadd.f32 0.0001, %v433_v60 }
 0x1be   :  { %v482_v63 = vsel %vm450_vm11, %v466_v61, %v434_v58 }
 0x1bf   :  { %498 = vst [vmem:[#allocation9 + $0x58] sm:$0xff] %v482_v63  ;;  %v481_v0 = vsel %vm449_vm12, %v465_v62, %v433_v60 }
 0x1c0   :  { %497 = vst [vmem:[#allocation9 + $0x50] sm:$0xff] %v481_v0 }
 0x1c1   :  { %v782_v5 = vpop.f32.mrb[12].mxu0 }
 0x1c2   :  { %v436_v6 = vadd.f32 %v782_v5, %v420_v2  ;;  %v278_v7 = vpop.f32.mrb[13].mxu0 }
 0x1c3   :  { %v435_v8 = vadd.f32 %v419_v4, %v278_v7 }
 0x1c4   :  { %v468_v9 = vadd.f32 0.0001, %v436_v6 }
 0x1c5   :  { %v467_v10 = vadd.f32 0.0001, %v435_v8 }
 0x1c6   :  { %v484_v11 = vsel %vm452_vm13, %v468_v9, %v436_v6 }
 0x1c7   :  { %500 = vst [vmem:[#allocation9 + $0x68] sm:$0xff] %v484_v11  ;;  %v483_v12 = vsel %vm451_vm14, %v467_v10, %v435_v8 }
 0x1c8   :  { %499 = vst [vmem:[#allocation9 + $0x60] sm:$0xff] %v483_v12 }
 0x1c9   :  { %v785_v17 = vpop.f32.mrb[14].mxu0 }
 0x1ca   :  { %v438_v18 = vadd.f32 %v785_v17, %v422_v14  ;;  %v288_v19 = vpop.f32.mrb[15].mxu0 }
 0x1cb   :  { %v437_v20 = vadd.f32 %v421_v16, %v288_v19 }
 0x1cc   :  { %v470_v21 = vadd.f32 0.0001, %v438_v18 }
 0x1cd   :  { %v469_v22 = vadd.f32 0.0001, %v437_v20 }
 0x1ce   :  { %v486_v23 = vsel %vm454_vm15, %v470_v21, %v438_v18 }
 0x1cf   :  { %502 = vst [vmem:[#allocation9 + $0x78] sm:$0xff] %v486_v23  ;;  %v485_v24 = vsel %vm453_vm0, %v469_v22, %v437_v20 }
 0x1d0   :  { %501 = vst [vmem:[#allocation9 + $0x70] sm:$0xff] %v485_v24 }
 0x1d1   :  { %943 = shalt.err (!%p940_p8)
}
 0x1d2   :  { %s944_s23 = scalar_lea.hbm %s1133_s5, 2048 }
 0x1d3   :  { %p945_p9 = scmp.ne.s32.totalorder %s1133_s5, %s944_s23  ;;  %p948_p10 = scmp.lt.u32.totalorder %s944_s23, %s1133_s5 }
 0x1d5   :  { %p950_p11 = pnand %p948_p10, %p945_p9 }
 0x1d7   :  { %953 = shalt.err (!%p950_p11)
}
 0x1d8   :  { %674 = dma.vmem_to_hbm [thread:$0]  %s669_s19, 2048, %s1133_s5, [#allocation10], %s966_s1, %s966_s1, %s967_s17  }
 0x1d9   :  { %958 = dma.done.wait [#allocation4], 1024  }
 0x1da   :  { %959 = vsyncadd [#allocation4], 4294966272 }
 0x1db   :  { %960 = dma.done.wait [#allocation10], 2048  }
 0x1dc   :  { %961 = vsyncadd [#allocation10], 4294965248 }
 0x1dd   :  { %681 = vsyncpa [#allocation3], 1 }
 0x1de   :  { %682 = vsyncpa [#allocation6], 1 }
 0x1df   :  { %683 = vsyncpa [#allocation4], 1 }
 0x1e0   :  { %684 = vsyncpa [#allocation10], 1 }

</bundles_post_ra>
